<compile_context>
chip_gen: v7x
topology: tpu7x:2x2x1
jax: 0.10.0
libtpu: 0.0.40
codegen_flags: <defaults>
</compile_context>

<pallas_src>
import jax
import jax.numpy as jnp
from jax.experimental import pallas as pl
from jax.experimental.pallas import tpu as pltpu


def _round_up(x: int, m: int) -> int:
    return ((x + m - 1) // m) * m


def _cdiv(a: int, b: int) -> int:
    return (a + b - 1) // b


def _ffn_kernel(x_ref, w13_ref, w2_ref, o_ref, acc_ref):
    """One (row-tile, hidden-tile) step of  (silu(x@w1t) * (x@w3t)) @ w2t.

    w13_ref holds this hidden tile's w1^T and w3^T columns side by side
    (dim, 2*th), so a single MXU matmul produces both projections.
    """
    j = pl.program_id(1)

    @pl.when(j == 0)
    def _():
        acc_ref[...] = jnp.zeros_like(acc_ref)

    x = x_ref[...]
    th = w2_ref.shape[0]
    # Fused dim -> 2*hidden projection for this hidden tile (f32 MXU accumulation).
    gu = jnp.dot(x, w13_ref[...], preferred_element_type=jnp.float32)
    g = gu[:, :th]
    u = gu[:, th:]
    # SiLU gate in f32 (sigmoid runs on the EUP slot, effectively free).
    h = (g * jax.nn.sigmoid(g)) * u
    # hidden -> dim projection, accumulated over hidden tiles in f32 scratch.
    acc_ref[...] += jnp.dot(h.astype(w2_ref.dtype), w2_ref[...],
                            preferred_element_type=jnp.float32)

    @pl.when(j == pl.num_programs(1) - 1)
    def _():
        o_ref[...] = acc_ref[...].astype(o_ref.dtype)


def _pick_tiles(rows, dim, hidden, bytes_c, bytes_out, budget):
    """Pick (row_tile, hidden_tile) to fill (but not blow) the VMEM budget.

    VMEM residency model (double-buffered inputs & output, f32 acc scratch):
      per unit of tm: dim * (2*bytes_c + 2*bytes_out + 4)   # x, out, acc
      per unit of th: dim * 6*bytes_c                       # [w1|w3] + w2, 2 bufs
    """
    per_tm = dim * (2 * bytes_c + 2 * bytes_out + 4)
    per_th = dim * (6 * bytes_c)

    hidden_cap = _round_up(hidden, 256)
    rows_cap = _round_up(rows, 8)
    # th a multiple of 256 (full MXU N width on v6e/v7x); hidden is zero-padded
    # up to a multiple of th in the wrapper (mathematically exact for this FFN).
    th_opts = [t for t in (2048, 1536, 1024, 768, 512, 256) if t <= hidden_cap] or [hidden_cap]
    tm_opts = [t for t in (512, 256, 128, 64, 32, 16, 8) if t <= rows_cap] or [rows_cap]

    def fits(tm, th):
        return tm * per_tm + th * per_th <= budget

    def th_cost(t):
        padded = _round_up(hidden, t)
        # padded ~ weight bytes / flops; (t+256)/t ~ per-step overhead
        # (accumulator read-modify-write + ~0.35us grid-step cost).
        return (padded * (t + 256) // t, padded, -t)

    if rows >= 512:
        # Prefill: big row tile first -- every extra row tile re-streams all
        # three weight matrices from HBM -- then the best hidden tile that fits.
        tm = next((t for t in tm_opts if fits(t, th_opts[-1])), tm_opts[-1])
    else:
        # Decode / small batch: weight streaming dominates regardless of tm, so
        # spend VMEM on the hidden tile (fewer reduction steps, less accumulator
        # writeback -- the first non-MXU slot to bind, especially on v5e).
        tm = tm_opts[0]

    fitting = [t for t in th_opts if fits(tm, t)]
    while not fitting and tm != tm_opts[-1]:
        tm = next(t for t in tm_opts if t < tm)
        fitting = [t for t in th_opts if fits(tm, t)]
    th = min(fitting, key=th_cost) if fitting else th_opts[-1]

    # v7x has 2 TensorCores: make sure the 'parallel' row axis has >= 2 programs
    # when there is enough work to split.
    if rows >= 256 and _cdiv(rows, tm) < 2:
        tm = max(128, _round_up(_cdiv(rows, 2), 128))
    return tm, th


def feed_forward(x: jax.Array, w1: jax.Array, w2: jax.Array, w3: jax.Array,
                 *, compute_dtype=jnp.bfloat16) -> jax.Array:
    """SwiGLU FFN: w2(silu(w1(x)) * w3(x)).

    x : (..., dim)
    w1: (hidden, dim)   # PyTorch nn.Linear weight layout (bias=False)
    w2: (dim, hidden)
    w3: (hidden, dim)

    Matmuls run in `compute_dtype` (bf16 default) with f32 accumulation; the
    single downcast to x.dtype happens at the final store.
    """
    orig_shape = x.shape
    dim = orig_shape[-1]
    hidden = w1.shape[0]
    assert w1.shape == (hidden, dim)
    assert w3.shape == (hidden, dim)
    assert w2.shape == (dim, hidden)

    rows = 1
    for s in orig_shape[:-1]:
        rows *= s

    x2d = x.reshape(rows, dim).astype(compute_dtype)
    bytes_c = jnp.dtype(compute_dtype).itemsize
    bytes_out = jnp.dtype(x.dtype).itemsize

    # --- VMEM-aware tile selection ------------------------------------------
    try:
        vmem_cap = pltpu.get_tpu_info().vmem_capacity_bytes
    except Exception:  # conservative fallback = v7x's 64 MiB
        vmem_cap = 64 * 1024 * 1024
    vmem_limit = min(vmem_cap * 7 // 8, 100 * 1024 * 1024)   # 100 MiB on v5e/v6e, ~56 MiB on v7x
    tile_budget = int(vmem_limit * 0.85)
    tm, th = _pick_tiles(rows, dim, hidden, bytes_c, bytes_out, tile_budget)

    hidden_pad = _round_up(hidden, th)
    n_h = hidden_pad // th

    # One-time transposes into (in, out) layout + cast to compute dtype.
    w1t = w1.T.astype(compute_dtype)   # (dim, hidden)
    w3t = w3.T.astype(compute_dtype)   # (dim, hidden)
    w2t = w2.T.astype(compute_dtype)   # (hidden, dim)
    if hidden_pad != hidden:
        pad = hidden_pad - hidden
        w1t = jnp.pad(w1t, ((0, 0), (0, pad)))
        w3t = jnp.pad(w3t, ((0, 0), (0, pad)))
        w2t = jnp.pad(w2t, ((0, pad), (0, 0)))
    # Interleave per hidden tile: columns [2*j*th, 2*j*th+th) are w1^T's tile j,
    # the next th are w3^T's tile j, so one BlockSpec / one DMA fetches both.
    w13 = jnp.concatenate(
        [w1t.reshape(dim, n_h, th), w3t.reshape(dim, n_h, th)], axis=2
    ).reshape(dim, 2 * hidden_pad)

    grid = (_cdiv(rows, tm), n_h)

    cost = pl.CostEstimate(
        flops=6 * rows * dim * hidden_pad,
        transcendentals=rows * hidden_pad,
        bytes_accessed=int(x2d.size * bytes_c + w13.size * bytes_c
                           + w2t.size * bytes_c + rows * dim * bytes_out),
    )

    out = pl.pallas_call(
        _ffn_kernel,
        out_shape=jax.ShapeDtypeStruct((rows, dim), x.dtype),
        grid_spec=pltpu.PrefetchScalarGridSpec(
            num_scalar_prefetch=0,
            grid=grid,
            in_specs=[
                pl.BlockSpec((tm, dim), lambda i, j: (i, 0)),        # x rows
                pl.BlockSpec((dim, 2 * th), lambda i, j: (0, j)),    # [w1|w3]^T tile
                pl.BlockSpec((th, dim), lambda i, j: (j, 0)),        # w2^T tile
            ],
            out_specs=pl.BlockSpec((tm, dim), lambda i, j: (i, 0)),
            scratch_shapes=[pltpu.VMEM((tm, dim), jnp.float32)],
        ),
        compiler_params=pltpu.CompilerParams(
            dimension_semantics=("parallel", "arbitrary"),
            vmem_limit_bytes=int(vmem_limit),
        ),
        cost_estimate=cost,
    )(x2d, w13, w2t)

    return out.reshape(orig_shape)


def _llama_hidden_dim(dim, hidden_dim, multiple_of, ffn_dim_multiplier=None):
    """Same hidden-dim derivation as llama's FeedForward.__init__."""
    hidden_dim = int(2 * hidden_dim / 3)
    if ffn_dim_multiplier is not None:
        hidden_dim = int(ffn_dim_multiplier * hidden_dim)
    hidden_dim = multiple_of * ((hidden_dim + multiple_of - 1) // multiple_of)
    return hidden_dim


if __name__ == "__main__":
    key = jax.random.PRNGKey(0)
    batch, seq, dim = 2, 8, 128
    multiple_of = 128
    hidden = _llama_hidden_dim(dim, 4 * dim, multiple_of, None)   # -> 384

    kx, k1, k2, k3 = jax.random.split(key, 4)
    x = jax.random.normal(kx, (batch, seq, dim), dtype=jnp.float32)
    # ColumnParallelLinear / RowParallelLinear weights, bias=False.
    # TODO(synk): tensor-model-parallel sharding of w1/w2/w3 has no single-device
    # Pallas equivalent; this implements the full (unsharded) forward.
    w1 = jax.random.normal(k1, (hidden, dim), dtype=jnp.float32) * (dim ** -0.5)
    w3 = jax.random.normal(k3, (hidden, dim), dtype=jnp.float32) * (dim ** -0.5)
    w2 = jax.random.normal(k2, (dim, hidden), dtype=jnp.float32) * (hidden ** -0.5)

    y = feed_forward(x, w1, w2, w3)
    jax.block_until_ready(y)

    # Matching-precision reference (bf16 matmuls, f32 accumulation) -- same math
    # as the kernel, so tolerances can stay tight.
    cd = jnp.bfloat16
    xb, w1b, w2b, w3b = (a.astype(cd) for a in (x, w1, w2, w3))
    g = jnp.dot(xb, w1b.T, preferred_element_type=jnp.float32)
    u = jnp.dot(xb, w3b.T, preferred_element_type=jnp.float32)
    h = (jax.nn.silu(g) * u).astype(cd)
    ref = jnp.dot(h, w2b.T, preferred_element_type=jnp.float32).astype(x.dtype)

    assert y.shape == x.shape
    assert y.dtype == x.dtype
    assert jnp.allclose(y, ref, rtol=2e-2, atol=2e-2), \
        float(jnp.max(jnp.abs(y - ref)))

    # Sanity check vs the full-precision PyTorch-equivalent math.
    ref_f32 = (jax.nn.silu(x @ w1.T) * (x @ w3.T)) @ w2.T
    assert jnp.allclose(y, ref_f32, rtol=1e-1, atol=1e-1), \
        float(jnp.max(jnp.abs(y - ref_f32)))

    print("KERNEL_OK")
</pallas_src>

<mosaic_0001>
module attributes {stable_mosaic.version = 11 : i64} {
  func.func @_ffn_kernel(%arg0: i32, %arg1: i32, %arg2: memref<16x128xbf16, #tpu.memory_space<vmem>>, %arg3: memref<128x1024xbf16, #tpu.memory_space<vmem>>, %arg4: memref<512x128xbf16, #tpu.memory_space<vmem>>, %arg5: memref<16x128xf32, #tpu.memory_space<vmem>>, %arg6: memref<16x128xf32, #tpu.memory_space<vmem>>) attributes {dimension_semantics = [#tpu.dimension_semantics<parallel>, #tpu.dimension_semantics<arbitrary>], iteration_bounds = array<i64: 1, 1>, scalar_prefetch = 0 : i64, scratch_operands = 1 : i64, tpu.core_type = #tpu.core_type<tc>, window_params = [{transform_indices = @transform_0, window_bounds = array<i64: 16, 128>}, {transform_indices = @transform_1, window_bounds = array<i64: 128, 1024>}, {transform_indices = @transform_2, window_bounds = array<i64: 512, 128>}, {transform_indices = @transform_3, window_bounds = array<i64: 16, 128>}]} {
    %c0_i32 = arith.constant 0 : i32
    %0 = arith.cmpi eq, %arg1, %c0_i32 : i32
    %1 = arith.extui %0 : i1 to i32
    %c0_i32_0 = arith.constant 0 : i32
    %2 = arith.cmpi ne, %1, %c0_i32_0 : i32
    scf.if %2 {
      %cst_14 = arith.constant 0.000000e+00 : f32
      %24 = vector.broadcast %cst_14 : f32 to vector<16x128xf32>
      %c0_15 = arith.constant 0 : index
      %c0_16 = arith.constant 0 : index
      %25 = vector.load %arg6[%c0_15, %c0_16] : memref<16x128xf32, #tpu.memory_space<vmem>>, vector<16x128xf32>
      tpu.vector_store %arg6[%c0_15, %c0_16], %24 {strides = array<i32>} : memref<16x128xf32, #tpu.memory_space<vmem>>, vector<16x128xf32>,
    } else {
    }
    %c0 = arith.constant 0 : index
    %c0_1 = arith.constant 0 : index
    %3 = vector.load %arg2[%c0, %c0_1] : memref<16x128xbf16, #tpu.memory_space<vmem>>, vector<16x128xbf16>
    %c0_2 = arith.constant 0 : index
    %c0_3 = arith.constant 0 : index
    %4 = vector.load %arg3[%c0_2, %c0_3] : memref<128x1024xbf16, #tpu.memory_space<vmem>>, vector<128x1024xbf16>
    %cst = arith.constant dense<0.000000e+00> : vector<16x1024xf32>
    %5 = tpu.matmul %3, %4, %cst {dimension_numbers = #tpu.dot_dimension_numbers<[1], [0], [0], [1], [0, 0, 1, 1], [], []>} : vector<16x128xbf16>, vector<128x1024xbf16>, vector<16x1024xf32> -> vector<16x1024xf32>
    %6 = vector.extract_strided_slice %5 {offsets = [0, 0], sizes = [16, 512], strides = [1, 1]} : vector<16x1024xf32> to vector<16x512xf32>
    %7 = vector.extract_strided_slice %5 {offsets = [0, 512], sizes = [16, 512], strides = [1, 1]} : vector<16x1024xf32> to vector<16x512xf32>
    %8 = arith.negf %6 : vector<16x512xf32>
    %9 = math.exp %8 : vector<16x512xf32>
    %cst_4 = arith.constant 1.000000e+00 : f32
    %10 = vector.broadcast %cst_4 : f32 to vector<16x512xf32>
    %11 = arith.addf %10, %9 : vector<16x512xf32>
    %12 = arith.divf %10, %11 : vector<16x512xf32>
    %13 = arith.mulf %6, %12 : vector<16x512xf32>
    %14 = arith.mulf %13, %7 : vector<16x512xf32>
    %c0_5 = arith.constant 0 : index
    %c0_6 = arith.constant 0 : index
    %15 = vector.load %arg6[%c0_5, %c0_6] : memref<16x128xf32, #tpu.memory_space<vmem>>, vector<16x128xf32>
    %16 = arith.truncf %14 : vector<16x512xf32> to vector<16x512xbf16>
    %c0_7 = arith.constant 0 : index
    %c0_8 = arith.constant 0 : index
    %17 = vector.load %arg4[%c0_7, %c0_8] : memref<512x128xbf16, #tpu.memory_space<vmem>>, vector<512x128xbf16>
    %cst_9 = arith.constant dense<0.000000e+00> : vector<16x128xf32>
    %18 = tpu.matmul %16, %17, %cst_9 {dimension_numbers = #tpu.dot_dimension_numbers<[1], [0], [0], [1], [0, 0, 1, 1], [], []>} : vector<16x512xbf16>, vector<512x128xbf16>, vector<16x128xf32> -> vector<16x128xf32>
    %19 = arith.addf %15, %18 : vector<16x128xf32>
    %c0_10 = arith.constant 0 : index
    %c0_11 = arith.constant 0 : index
    %20 = vector.load %arg6[%c0_10, %c0_11] : memref<16x128xf32, #tpu.memory_space<vmem>>, vector<16x128xf32>
    tpu.vector_store %arg6[%c0_10, %c0_11], %19 {strides = array<i32>} : memref<16x128xf32, #tpu.memory_space<vmem>>, vector<16x128xf32>,
    %c0_i32_12 = arith.constant 0 : i32
    %21 = arith.cmpi eq, %arg1, %c0_i32_12 : i32
    %22 = arith.extui %21 : i1 to i32
    %c0_i32_13 = arith.constant 0 : i32
    %23 = arith.cmpi ne, %22, %c0_i32_13 : i32
    scf.if %23 {
      %c0_14 = arith.constant 0 : index
      %c0_15 = arith.constant 0 : index
      %24 = vector.load %arg6[%c0_14, %c0_15] : memref<16x128xf32, #tpu.memory_space<vmem>>, vector<16x128xf32>
      %c0_16 = arith.constant 0 : index
      %c0_17 = arith.constant 0 : index
      %25 = vector.load %arg5[%c0_16, %c0_17] : memref<16x128xf32, #tpu.memory_space<vmem>>, vector<16x128xf32>
      tpu.vector_store %arg5[%c0_16, %c0_17], %24 {strides = array<i32>} : memref<16x128xf32, #tpu.memory_space<vmem>>, vector<16x128xf32>,
    } else {
    }
    return
  }
  func.func @transform_0(%arg0: i32, %arg1: i32) -> (i32, i32) {
    %c0_i32 = arith.constant 0 : i32
    %c0_i32_0 = arith.constant 0 : i32
    return %arg0, %c0_i32 : i32, i32
  }
  func.func @transform_1(%arg0: i32, %arg1: i32) -> (i32, i32) {
    %c0_i32 = arith.constant 0 : i32
    %c0_i32_0 = arith.constant 0 : i32
    return %c0_i32, %arg1 : i32, i32
  }
  func.func @transform_2(%arg0: i32, %arg1: i32) -> (i32, i32) {
    %c0_i32 = arith.constant 0 : i32
    %c0_i32_0 = arith.constant 0 : i32
    return %arg1, %c0_i32 : i32, i32
  }
  func.func @transform_3(%arg0: i32, %arg1: i32) -> (i32, i32) {
    %c0_i32 = arith.constant 0 : i32
    %c0_i32_0 = arith.constant 0 : i32
    return %arg0, %c0_i32 : i32, i32
  }
}

</mosaic_0001>

<bundles_post_ra>
// kernel: tpu_custom_call.1
= control target key start
LH: loop header
LB: loop body
LE: loop exit
PB: predicated region body
PF: predicated region fallthrough
CT: control target
= control target key end

     0   :  { %8 = vsyncpa [#allocation4], 0  ;;  %s1472_s0 = inlined_call_operand.hbm [shape: bf16[16,128], index: 0, kind: input, shape index: {}]   ;;  %s1473_s1 = inlined_call_operand.hbm [shape: bf16[128,1024], index: 1, kind: input, shape index: {}]   ;;  %s1474_s2 = inlined_call_operand.hbm [shape: bf16[512,128], index: 2, kind: input, shape index: {}]   ;;  %s1475_s3 = inlined_call_operand.hbm [shape: f32[16,128], index: 3, kind: output, shape index: {}]  }
   0x1   :  { %9 = vsyncpa [#allocation7], 0 }
   0x2   :  { %10 = vsyncpa [#allocation5], 0  ;;  %s1383_s12 = smov [#allocation6]   ;;  %s1289_s16 = scalar_lea.hbm %s1473_s1, 8192 }
   0x3   :  { %s28_s13 = sshll.u32 %s1383_s12, 4  ;;  %p1290_p0 = scmp.ne.s32.totalorder %s1473_s1, %s1289_s16  ;;  %s29_s13 = int_to_ptr.vmem [resolvable:$true] %s28_s13 }
   0x4   :  { %p1293_p1 = scmp.lt.u32.totalorder %s1289_s16, %s1473_s1 }
   0x6   :  { %p1295_p2 = pnand %p1293_p1, %p1290_p0 }
   0x8   :  { %1298 = shalt.err (!%p1295_p2)
}
   0x9   :  { %s1299_s21 = scalar_lea.vmem %s29_s13, 8192  ;;  %p1304_p4 = scmp.lt.s32.totalorder %s29_s13, %s29_s13 }
   0xa   :  { %p1300_p3 = scmp.ne.s32.totalorder %s29_s13, %s1299_s21  ;;  %p1305_p5 = scmp.lt.s32.totalorder %s1299_s21, %s1299_s21 }
   0xc   :  { %p1306_p6 = por %p1305_p5, %p1304_p4 }
   0xe   :  { %p1307_p7 = pnand %p1306_p6, %p1300_p3 }
  0x10   :  { %1310 = shalt.err (!%p1307_p7)
}
  0x11   :  { %s1384_s22 = smov 512   ;;  %s1385_s23 = smov 32  }
  0x12   :  { %34 = dma.hbm_to_vmem [thread:$0]  %s1473_s1, 8192, %s29_s13, [#allocation7], %s1384_s22, %s1384_s22, %s1385_s23  }
  0x13   :  { %s1386_s26 = smov [#allocation3]   ;;  %s1311_s30 = scalar_lea.hbm %s1472_s0, 128 }
  0x14   :  { %s16_s27 = sshll.u32 %s1386_s26, 4  ;;  %p1312_p8 = scmp.ne.s32.totalorder %s1472_s0, %s1311_s30  ;;  %s17_s27 = int_to_ptr.vmem [resolvable:$true] %s16_s27 }
  0x15   :  { %p1315_p9 = scmp.lt.u32.totalorder %s1311_s30, %s1472_s0 }
  0x17   :  { %p1317_p10 = pnand %p1315_p9, %p1312_p8 }
  0x19   :  { %1320 = shalt.err (!%p1317_p10)
}
  0x1a   :  { %s1321_s8 = scalar_lea.vmem %s17_s27, 128  ;;  %p1326_p12 = scmp.lt.s32.totalorder %s17_s27, %s17_s27 }
  0x1b   :  { %p1322_p11 = scmp.ne.s32.totalorder %s17_s27, %s1321_s8  ;;  %p1327_p13 = scmp.lt.s32.totalorder %s1321_s8, %s1321_s8 }
  0x1d   :  { %p1328_p0 = por %p1327_p13, %p1326_p12 }
  0x1f   :  { %p1329_p1 = pnand %p1328_p0, %p1322_p11 }
  0x21   :  { %1332 = shalt.err (!%p1329_p1)
}
  0x22   :  { %s1387_s1 = smov 64   ;;  %s1388_s9 = smov 4  }
  0x23   :  { %22 = dma.hbm_to_vmem [thread:$0]  %s1472_s0, 128, %s17_s27, [#allocation4], %s1387_s1, %s1387_s1, %s1388_s9  }
  0x24   :  { %s1389_s12 = smov [#allocation8]   ;;  %s1333_s16 = scalar_lea.hbm %s1474_s2, 4096 }
  0x25   :  { %s40_s13 = sshll.u32 %s1389_s12, 4  ;;  %p1334_p2 = scmp.ne.s32.totalorder %s1474_s2, %s1333_s16  ;;  %s41_s13 = int_to_ptr.vmem [resolvable:$true] %s40_s13 }
  0x26   :  { %p1337_p3 = scmp.lt.u32.totalorder %s1333_s16, %s1474_s2 }
  0x28   :  { %p1339_p4 = pnand %p1337_p3, %p1334_p2 }
  0x2a   :  { %1342 = shalt.err (!%p1339_p4)
}
  0x2b   :  { %s1343_s21 = scalar_lea.vmem %s41_s13, 4096  ;;  %p1348_p6 = scmp.lt.s32.totalorder %s41_s13, %s41_s13 }
  0x2c   :  { %p1344_p5 = scmp.ne.s32.totalorder %s41_s13, %s1343_s21  ;;  %p1349_p7 = scmp.lt.s32.totalorder %s1343_s21, %s1343_s21 }
  0x2e   :  { %p1350_p8 = por %p1349_p7, %p1348_p6 }
  0x30   :  { %p1351_p9 = pnand %p1350_p8, %p1344_p5 }
  0x32   :  { %1354 = shalt.err (!%p1351_p9)
}
  0x33   :  { %46 = dma.hbm_to_vmem [thread:$0]  %s1474_s2, 4096, %s41_s13, [#allocation7], %s1387_s1, %s1387_s1, %s1388_s9  }
  0x34   :  { %1377 = dma.done.wait [#allocation4], 128  }
  0x35   :  { %1378 = vsyncadd [#allocation4], 4294967168 }
  0x36   :  { %1379 = dma.done.wait [#allocation7], 12288  }
  0x37   :  { %1380 = vsyncadd [#allocation7], 4294955008  ;;  %v1390_v0 = vmov 0   ;;  %v65_v1 = vld [vmem:[#allocation6] sm:$0xff]  ;;  %v66_v3 = vld [vmem:[#allocation6 + $0x8] sm:$0xff]  ;;  %s1391_s2 = smov [#allocation9]  }
  0x38   :  { %487 = vmatprep.mubr.bf16.mxu0 %v1390_v0  ;;  %530 = vmatprep.mubr.bf16.mxu1 %v1390_v0  ;;  %v69_v2 = vld [vmem:[#allocation6 + $0x20] sm:$0xff]  ;;  %v70_v5 = vld [vmem:[#allocation6 + $0x28] sm:$0xff]  ;;  %v67_v60 = vld [vmem:[#allocation6 + $0x10] sm:$0xff]  ;;  %s1051_s23 = sshll.u32 %s1391_s2, 4  ;;  %s1052_s23 = int_to_ptr.vmem [resolvable:$true] %s1051_s23 }
  0x39   :  { %v1066_v4 = vcombine.high %v65_v1, %v69_v2  ;;  %v1065_v6 = vcombine.low %v65_v1, %v69_v2  ;;  %v73_v7 = vld [vmem:[#allocation6 + $0x40] sm:$0xff]  ;;  %v1068_v9 = vcombine.high %v66_v3, %v70_v5  ;;  %v1067_v10 = vcombine.low %v66_v3, %v70_v5  ;;  %v74_v12 = vld [vmem:[#allocation6 + $0x48] sm:$0xff]  ;;  %v71_v61 = vld [vmem:[#allocation6 + $0x30] sm:$0xff]  ;;  %s1355_s24 = scalar_lea.vmem %s1052_s23, 256  ;;  %p1360_p11 = scmp.lt.s32.totalorder %s1052_s23, %s1052_s23 }
  0x3a   :  { %v77_v8 = vld [vmem:[#allocation6 + $0x60] sm:$0xff]  ;;  %v78_v13 = vld [vmem:[#allocation6 + $0x68] sm:$0xff]  ;;  %v68_v1 = vld [vmem:[#allocation6 + $0x18] sm:$0xff]  ;;  %p1356_p10 = scmp.ne.s32.totalorder %s1052_s23, %s1355_s24  ;;  %p1361_p12 = scmp.lt.s32.totalorder %s1355_s24, %s1355_s24 }
  0x3b   :  { %v1074_v11 = vcombine.high %v73_v7, %v77_v8  ;;  %v81_v14 = vld [vmem:[#allocation6 + $0x80] sm:$0xff]  ;;  %455 = vmatprep.subr.bf16.mxu0 %v1066_v4  ;;  %v1076_v15 = vcombine.high %v74_v12, %v78_v13  ;;  %v82_v17 = vld [vmem:[#allocation6 + $0x88] sm:$0xff]  ;;  %498 = vmatprep.subr.bf16.mxu1 %v1068_v9  ;;  %v1073_v19 = vcombine.low %v73_v7, %v77_v8  ;;  %v72_v2 = vld [vmem:[#allocation6 + $0x38] sm:$0xff] }
  0x3c   :  { %v85_v16 = vld [vmem:[#allocation6 + $0xa0] sm:$0xff]  ;;  %v86_v18 = vld [vmem:[#allocation6 + $0xa8] sm:$0xff]  ;;  %456 = vmatpush1.bf16.msra.mxu0 %v1065_v6  ;;  %499 = vmatpush1.bf16.msra.mxu1 %v1067_v10  ;;  %v1075_v20 = vcombine.low %v74_v12, %v78_v13  ;;  %v75_v5 = vld [vmem:[#allocation6 + $0x50] sm:$0xff]  ;;  %v1070_v9 = vcombine.high %v67_v60, %v71_v61  ;;  %v1072_v12 = vcombine.high %v68_v1, %v72_v2  ;;  %p1362_p13 = por %p1361_p12, %p1360_p11 }
  0x3d   :  { %457 = vmatprep.subr.bf16.mxu0 %v1074_v11  ;;  %v1082_v21 = vcombine.high %v81_v14, %v85_v16  ;;  %500 = vmatprep.subr.bf16.mxu1 %v1076_v15  ;;  %v1084_v22 = vcombine.high %v82_v17, %v86_v18  ;;  %v89_v23 = vld [vmem:[#allocation6 + $0xc0] sm:$0xff]  ;;  %v90_v25 = vld [vmem:[#allocation6 + $0xc8] sm:$0xff]  ;;  %v1081_v27 = vcombine.low %v81_v14, %v85_v16  ;;  %v79_v6 = vld [vmem:[#allocation6 + $0x70] sm:$0xff] }
  0x3e   :  { %v93_v24 = vld [vmem:[#allocation6 + $0xe0] sm:$0xff]  ;;  %v94_v26 = vld [vmem:[#allocation6 + $0xe8] sm:$0xff]  ;;  %v1083_v28 = vcombine.low %v82_v17, %v86_v18  ;;  %v1452_v8 = vld [vmem:[#allocation3] sm:$0xff]   ;;  %v1069_v13 = vcombine.low %v67_v60, %v71_v61  ;;  %v1071_v16 = vcombine.low %v68_v1, %v72_v2  ;;  %v1078_v17 = vcombine.high %v75_v5, %v79_v6  ;;  %p1363_p0 = pnand %p1362_p13, %p1356_p10 }
  0x3f   :  { %v1090_v29 = vcombine.high %v89_v23, %v93_v24  ;;  %v1092_v30 = vcombine.high %v90_v25, %v94_v26  ;;  %v97_v31 = vld [vmem:[#allocation6 + $0x100] sm:$0xff]  ;;  %v98_v33 = vld [vmem:[#allocation6 + $0x108] sm:$0xff]  ;;  %v1089_v35 = vcombine.low %v89_v23, %v93_v24  ;;  %v1091_v36 = vcombine.low %v90_v25, %v94_v26  ;;  %v76_v10 = vld [vmem:[#allocation6 + $0x58] sm:$0xff] }
  0x40   :  { %458 = vmatpush1.bf16.msra.mxu0 %v1073_v19  ;;  %501 = vmatpush1.bf16.msra.mxu1 %v1075_v20  ;;  %v101_v32 = vld [vmem:[#allocation6 + $0x120] sm:$0xff]  ;;  %v102_v34 = vld [vmem:[#allocation6 + $0x128] sm:$0xff]  ;;  %v80_v11 = vld [vmem:[#allocation6 + $0x78] sm:$0xff] }
  0x41   :  { %459 = vmatprep.subr.bf16.mxu0 %v1082_v21  ;;  %502 = vmatprep.subr.bf16.mxu1 %v1084_v22  ;;  %v1098_v37 = vcombine.high %v97_v31, %v101_v32  ;;  %v1100_v38 = vcombine.high %v98_v33, %v102_v34  ;;  %v105_v39 = vld [vmem:[#allocation6 + $0x140] sm:$0xff]  ;;  %v106_v41 = vld [vmem:[#allocation6 + $0x148] sm:$0xff]  ;;  %v1097_v43 = vcombine.low %v97_v31, %v101_v32  ;;  %v83_v14 = vld [vmem:[#allocation6 + $0x90] sm:$0xff] }
  0x42   :  { %v109_v40 = vld [vmem:[#allocation6 + $0x160] sm:$0xff]  ;;  %v110_v42 = vld [vmem:[#allocation6 + $0x168] sm:$0xff]  ;;  %v1099_v44 = vcombine.low %v98_v33, %v102_v34  ;;  %v87_v15 = vld [vmem:[#allocation6 + $0xb0] sm:$0xff]  ;;  %v1080_v20 = vcombine.high %v76_v10, %v80_v11  ;;  %v1077_v21 = vcombine.low %v75_v5, %v79_v6  ;;  %v1079_v24 = vcombine.low %v76_v10, %v80_v11 }
  0x43   :  { %v1106_v45 = vcombine.high %v105_v39, %v109_v40  ;;  %v1108_v46 = vcombine.high %v106_v41, %v110_v42  ;;  %v113_v47 = vld [vmem:[#allocation6 + $0x180] sm:$0xff]  ;;  %v114_v49 = vld [vmem:[#allocation6 + $0x188] sm:$0xff]  ;;  %v1105_v51 = vcombine.low %v105_v39, %v109_v40  ;;  %v1107_v52 = vcombine.low %v106_v41, %v110_v42  ;;  %v84_v18 = vld [vmem:[#allocation6 + $0x98] sm:$0xff] }
  0x44   :  { %460 = vmatpush1.bf16.msra.mxu0 %v1081_v27  ;;  %503 = vmatpush1.bf16.msra.mxu1 %v1083_v28  ;;  %v117_v48 = vld [vmem:[#allocation6 + $0x1a0] sm:$0xff]  ;;  %v118_v50 = vld [vmem:[#allocation6 + $0x1a8] sm:$0xff]  ;;  %v88_v19 = vld [vmem:[#allocation6 + $0xb8] sm:$0xff]  ;;  %v1086_v25 = vcombine.high %v83_v14, %v87_v15 }
  0x45   :  { %461 = vmatprep.subr.bf16.mxu0 %v1090_v29  ;;  %504 = vmatprep.subr.bf16.mxu1 %v1092_v30  ;;  %v1114_v53 = vcombine.high %v113_v47, %v117_v48  ;;  %v121_v54 = vld [vmem:[#allocation6 + $0x1c0] sm:$0xff]  ;;  %v122_v56 = vld [vmem:[#allocation6 + $0x1c8] sm:$0xff]  ;;  %v1116_v57 = vcombine.high %v114_v49, %v118_v50  ;;  %v1113_v59 = vcombine.low %v113_v47, %v117_v48  ;;  %v91_v22 = vld [vmem:[#allocation6 + $0xd0] sm:$0xff] }
  0x46   :  { %v125_v55 = vld [vmem:[#allocation6 + $0x1e0] sm:$0xff]  ;;  %v126_v58 = vld [vmem:[#allocation6 + $0x1e8] sm:$0xff]  ;;  %v1115_v62 = vcombine.low %v114_v49, %v118_v50  ;;  %v95_v23 = vld [vmem:[#allocation6 + $0xf0] sm:$0xff]  ;;  %v1088_v28 = vcombine.high %v84_v18, %v88_v19  ;;  %v1085_v29 = vcombine.low %v83_v14, %v87_v15  ;;  %v1087_v32 = vcombine.low %v84_v18, %v88_v19 }
  0x47   :  { %v1122_v63 = vcombine.high %v121_v54, %v125_v55  ;;  %v1124_v3 = vcombine.high %v122_v56, %v126_v58  ;;  %v1121_v4 = vcombine.low %v121_v54, %v125_v55  ;;  %v1123_v7 = vcombine.low %v122_v56, %v126_v58  ;;  %v92_v26 = vld [vmem:[#allocation6 + $0xd8] sm:$0xff]  ;;  %v99_v30 = vld [vmem:[#allocation6 + $0x110] sm:$0xff]  ;;  %v1227_v5 = vld [vmem:[#allocation8] sm:$0xff]  }
  0x48   :  { %462 = vmatpush1.bf16.msra.mxu0 %v1089_v35  ;;  %505 = vmatpush1.bf16.msra.mxu1 %v1091_v36  ;;  %v96_v27 = vld [vmem:[#allocation6 + $0xf8] sm:$0xff]  ;;  %v103_v31 = vld [vmem:[#allocation6 + $0x130] sm:$0xff]  ;;  %v1094_v33 = vcombine.high %v91_v22, %v95_v23  ;;  %v1228_v6 = vld [vmem:[#allocation8 + $0x80] sm:$0xff]  }
  0x49   :  { %463 = vmatprep.subr.bf16.mxu0 %v1098_v37  ;;  %506 = vmatprep.subr.bf16.mxu1 %v1100_v38  ;;  %v100_v34 = vld [vmem:[#allocation6 + $0x118] sm:$0xff]  ;;  %v1096_v35 = vcombine.high %v92_v26, %v96_v27  ;;  %v1093_v37 = vcombine.low %v91_v22, %v95_v23  ;;  %v1095_v38 = vcombine.low %v92_v26, %v96_v27  ;;  %v107_v40 = vld [vmem:[#allocation6 + $0x150] sm:$0xff]  ;;  %v1231_v10 = vld [vmem:[#allocation8 + $0x8] sm:$0xff]  }
  0x4a   :  { %v104_v36 = vld [vmem:[#allocation6 + $0x138] sm:$0xff]  ;;  %v1102_v39 = vcombine.high %v99_v30, %v103_v31  ;;  %v111_v41 = vld [vmem:[#allocation6 + $0x170] sm:$0xff]  ;;  %v1232_v11 = vld [vmem:[#allocation8 + $0x88] sm:$0xff]  }
  0x4b   :  { %v108_v42 = vld [vmem:[#allocation6 + $0x158] sm:$0xff]  ;;  %v115_v48 = vld [vmem:[#allocation6 + $0x190] sm:$0xff]  ;;  %v1241_v19 = vld [vmem:[#allocation8 + $0x60] sm:$0xff]  }
  0x4c   :  { %464 = vmatpush1.bf16.msra.mxu0 %v1097_v43  ;;  %507 = vmatpush1.bf16.msra.mxu1 %v1099_v44  ;;  %v112_v43 = vld [vmem:[#allocation6 + $0x178] sm:$0xff]  ;;  %v1101_v44 = vcombine.low %v99_v30, %v103_v31  ;;  %v119_v49 = vld [vmem:[#allocation6 + $0x1b0] sm:$0xff]  ;;  %v1244_v22 = vld [vmem:[#allocation8 + $0xa0] sm:$0xff]  }
  0x4d   :  { %465 = vmatprep.subr.bf16.mxu0 %v1106_v45  ;;  %508 = vmatprep.subr.bf16.mxu1 %v1108_v46  ;;  %v1103_v45 = vcombine.low %v100_v34, %v104_v36  ;;  %v1110_v46 = vcombine.high %v107_v40, %v111_v41  ;;  %v1112_v47 = vcombine.high %v108_v42, %v112_v43  ;;  %v116_v50 = vld [vmem:[#allocation6 + $0x198] sm:$0xff]  ;;  %v123_v56 = vld [vmem:[#allocation6 + $0x1d0] sm:$0xff]  ;;  %v1245_v23 = vld [vmem:[#allocation8 + $0x68] sm:$0xff]  }
  0x4e   :  { %v1118_v54 = vcombine.high %v115_v48, %v119_v49  ;;  %v124_v58 = vld [vmem:[#allocation6 + $0x1d8] sm:$0xff]  ;;  %v1117_v60 = vcombine.low %v115_v48, %v119_v49  ;;  %v1235_v14 = vld [vmem:[#allocation8 + $0x10] sm:$0xff]   ;;  %v1248_v26 = vld [vmem:[#allocation8 + $0xa8] sm:$0xff]  }
  0x4f   :  { %v1237_v15 = vld [vmem:[#allocation8 + $0x58] sm:$0xff]   ;;  %v1249_v27 = vld [vmem:[#allocation8 + $0x70] sm:$0xff]  }
  0x50   :  { %466 = vmatpush1.bf16.msra.mxu0 %v1105_v51  ;;  %509 = vmatpush1.bf16.msra.mxu1 %v1107_v52  ;;  %v120_v51 = vld [vmem:[#allocation6 + $0x1b8] sm:$0xff]  ;;  %v1109_v52 = vcombine.low %v107_v40, %v111_v41  ;;  %v1252_v30 = vld [vmem:[#allocation8 + $0xb0] sm:$0xff]  }
  0x51   :  { %467 = vmatprep.subr.bf16.mxu0 %v1114_v53  ;;  %510 = vmatprep.subr.bf16.mxu1 %v1116_v57  ;;  %v1111_v53 = vcombine.low %v108_v42, %v112_v43  ;;  %v1120_v55 = vcombine.high %v116_v50, %v120_v51  ;;  %v127_v57 = vld [vmem:[#allocation6 + $0x1f0] sm:$0xff]  ;;  %v1119_v61 = vcombine.low %v116_v50, %v120_v51  ;;  %v1240_v18 = vld [vmem:[#allocation8 + $0x98] sm:$0xff]  }
  0x52   :  { %v1125_v1 = vcombine.low %v123_v56, %v127_v57  ;;  %v1253_v31 = vld [vmem:[#allocation8 + $0x78] sm:$0xff]  }
  0x54   :  { %468 = vmatpush1.bf16.msra.mxu0 %v1113_v59  ;;  %511 = vmatpush1.bf16.msra.mxu1 %v1115_v62  ;;  %v128_v59 = vld [vmem:[#allocation6 + $0x1f8] sm:$0xff]  ;;  %v1126_v62 = vcombine.high %v123_v56, %v127_v57 }
  0x55   :  { %469 = vmatprep.subr.bf16.mxu0 %v1122_v63  ;;  %512 = vmatprep.subr.bf16.mxu1 %v1124_v3  ;;  %v1128_v63 = vcombine.high %v124_v58, %v128_v59  ;;  %v1127_v2 = vcombine.low %v124_v58, %v128_v59  ;;  %v1225_v3 = vld [vmem:[#allocation8 + $0x40] sm:$0xff]  }
  0x58   :  { %470 = vmatpush1.bf16.msra.mxu0 %v1121_v4  ;;  %513 = vmatpush1.bf16.msra.mxu1 %v1123_v7  ;;  %v1226_v4 = vld [vmem:[#allocation8 + $0xc0] sm:$0xff]   ;;  %v1229_v7 = vld [vmem:[#allocation8 + $0x48] sm:$0xff]  }
  0x59   :  { %541 = vmatprep.subr.bf16.mxu0 %v1070_v9  ;;  %584 = vmatprep.subr.bf16.mxu1 %v1072_v12  ;;  %v1230_v9 = vld [vmem:[#allocation8 + $0xc8] sm:$0xff]   ;;  %v1233_v12 = vld [vmem:[#allocation8 + $0x50] sm:$0xff]  }
  0x5b   :  { %488 = vmatmul.mubr.bf16.vlgmr.msra.gmra.mrb[0].mxu0 %v1452_v8  ;;  %531 = vmatmul.mubr.bf16.vlgmr.msra.gmra.mrb[0].mxu1 %v1452_v8 }
  0x5c   :  { %542 = vmatpush1.bf16.msra.mxu0 %v1069_v13  ;;  %585 = vmatpush1.bf16.msra.mxu1 %v1071_v16  ;;  %v1234_v13 = vld [vmem:[#allocation8 + $0xd0] sm:$0xff]   ;;  %v1238_v16 = vld [vmem:[#allocation8 + $0xd8] sm:$0xff]  }
  0x5d   :  { %543 = vmatprep.subr.bf16.mxu0 %v1078_v17  ;;  %586 = vmatprep.subr.bf16.mxu1 %v1080_v20  ;;  %v1239_v17 = vld [vmem:[#allocation8 + $0x18] sm:$0xff]   ;;  %v1242_v20 = vld [vmem:[#allocation8 + $0xe0] sm:$0xff]  }
  0x5e   :  { %573 = vmatprep.mubr.bf16.mxu0 %v1390_v0  ;;  %616 = vmatprep.mubr.bf16.mxu1 %v1390_v0  ;;  %v1104_v0 = vcombine.high %v100_v34, %v104_v36  ;;  %v1256_v34 = vld [vmem:[#allocation8 + $0xb8] sm:$0xff]  }
  0x60   :  { %544 = vmatpush1.bf16.msra.mxu0 %v1077_v21  ;;  %587 = vmatpush1.bf16.msra.mxu1 %v1079_v24  ;;  %v1243_v21 = vld [vmem:[#allocation8 + $0x20] sm:$0xff]   ;;  %v1246_v24 = vld [vmem:[#allocation8 + $0xe8] sm:$0xff]  }
  0x61   :  { %545 = vmatprep.subr.bf16.mxu0 %v1086_v25  ;;  %588 = vmatprep.subr.bf16.mxu1 %v1088_v28  ;;  %v1247_v25 = vld [vmem:[#allocation8 + $0x28] sm:$0xff]   ;;  %v1250_v28 = vld [vmem:[#allocation8 + $0xf0] sm:$0xff]  }
  0x64   :  { %546 = vmatpush1.bf16.msra.mxu0 %v1085_v29  ;;  %589 = vmatpush1.bf16.msra.mxu1 %v1087_v32  ;;  %v1251_v29 = vld [vmem:[#allocation8 + $0x30] sm:$0xff]   ;;  %v1254_v32 = vld [vmem:[#allocation8 + $0xf8] sm:$0xff]  }
  0x65   :  { %547 = vmatprep.subr.bf16.mxu0 %v1094_v33  ;;  %590 = vmatprep.subr.bf16.mxu1 %v1096_v35  ;;  %v1255_v33 = vld [vmem:[#allocation8 + $0x38] sm:$0xff]  }
  0x68   :  { %548 = vmatpush1.bf16.msra.mxu0 %v1093_v37  ;;  %591 = vmatpush1.bf16.msra.mxu1 %v1095_v38 }
  0x69   :  { %549 = vmatprep.subr.bf16.mxu0 %v1102_v39  ;;  %592 = vmatprep.subr.bf16.mxu1 %v1104_v0 }
  0x6c   :  { %550 = vmatpush1.bf16.msra.mxu0 %v1101_v44  ;;  %593 = vmatpush1.bf16.msra.mxu1 %v1103_v45 }
  0x6d   :  { %551 = vmatprep.subr.bf16.mxu0 %v1110_v46  ;;  %594 = vmatprep.subr.bf16.mxu1 %v1112_v47 }
  0x70   :  { %552 = vmatpush1.bf16.msra.mxu0 %v1109_v52  ;;  %595 = vmatpush1.bf16.msra.mxu1 %v1111_v53 }
  0x71   :  { %553 = vmatprep.subr.bf16.mxu0 %v1118_v54  ;;  %596 = vmatprep.subr.bf16.mxu1 %v1120_v55 }
  0x74   :  { %554 = vmatpush1.bf16.msra.mxu0 %v1117_v60  ;;  %597 = vmatpush1.bf16.msra.mxu1 %v1119_v61 }
  0x75   :  { %555 = vmatprep.subr.bf16.mxu0 %v1126_v62  ;;  %598 = vmatprep.subr.bf16.mxu1 %v1128_v63 }
  0x78   :  { %556 = vmatpush1.bf16.msra.mxu0 %v1125_v1  ;;  %599 = vmatpush1.bf16.msra.mxu1 %v1127_v2 }
  0x79   :  { %1169 = vmatprep.subr.bf16.mxu0 %v1225_v3  ;;  %1191 = vmatprep.subr.bf16.mxu1 %v1226_v4 }
  0x7b   :  { %574 = vmatmul.mubr.bf16.vlgmr.msra.gmra.mrb[4].mxu0 %v1452_v8  ;;  %617 = vmatmul.mubr.bf16.vlgmr.msra.gmra.mrb[4].mxu1 %v1452_v8  ;;  %v1236_v8 = vld [vmem:[#allocation8 + $0x90] sm:$0xff]  }
  0x7c   :  { %1170 = vmatpush3.bf16.msra.mxu0 %v1227_v5  ;;  %1192 = vmatpush3.bf16.msra.mxu1 %v1228_v6 }
  0x7d   :  { %1171 = vmatprep.subr.bf16.mxu0 %v1229_v7  ;;  %1193 = vmatprep.subr.bf16.mxu1 %v1230_v9 }
  0x80   :  { %1172 = vmatpush3.bf16.msra.mxu0 %v1231_v10  ;;  %1194 = vmatpush3.bf16.msra.mxu1 %v1232_v11 }
  0x81   :  { %1173 = vmatprep.subr.bf16.mxu0 %v1233_v12  ;;  %1195 = vmatprep.subr.bf16.mxu1 %v1234_v13 }
  0x84   :  { %1174 = vmatpush3.bf16.msra.mxu0 %v1235_v14  ;;  %1196 = vmatpush3.bf16.msra.mxu1 %v1236_v8 }
  0x85   :  { %1175 = vmatprep.subr.bf16.mxu0 %v1237_v15  ;;  %1197 = vmatprep.subr.bf16.mxu1 %v1238_v16 }
  0x88   :  { %1176 = vmatpush3.bf16.msra.mxu0 %v1239_v17  ;;  %1198 = vmatpush3.bf16.msra.mxu1 %v1240_v18 }
  0x89   :  { %1177 = vmatprep.subr.bf16.mxu0 %v1241_v19  ;;  %1199 = vmatprep.subr.bf16.mxu1 %v1242_v20 }
  0x8c   :  { %1178 = vmatpush3.bf16.msra.mxu0 %v1243_v21  ;;  %1200 = vmatpush3.bf16.msra.mxu1 %v1244_v22 }
  0x8d   :  { %1179 = vmatprep.subr.bf16.mxu0 %v1245_v23  ;;  %1201 = vmatprep.subr.bf16.mxu1 %v1246_v24 }
  0x90   :  { %1180 = vmatpush3.bf16.msra.mxu0 %v1247_v25  ;;  %1202 = vmatpush3.bf16.msra.mxu1 %v1248_v26 }
  0x91   :  { %1181 = vmatprep.subr.bf16.mxu0 %v1249_v27  ;;  %1203 = vmatprep.subr.bf16.mxu1 %v1250_v28 }
  0x94   :  { %1182 = vmatpush3.bf16.msra.mxu0 %v1251_v29  ;;  %1204 = vmatpush3.bf16.msra.mxu1 %v1252_v30 }
  0x95   :  { %1183 = vmatprep.subr.bf16.mxu0 %v1253_v31  ;;  %1205 = vmatprep.subr.bf16.mxu1 %v1254_v32 }
  0x98   :  { %1184 = vmatpush3.bf16.msra.mxu0 %v1255_v33  ;;  %1206 = vmatpush3.bf16.msra.mxu1 %v1256_v34 }
 0x12e   :  { %v489_v35 = vpop.f32.mrb[0].mxu0  ;;  %v532_v37 = vpop.f32.mrb[0].mxu1 }
 0x12f   :  { %v1129_v36 = vmul.f32 -1.442695, %v489_v35  ;;  %v491_v38 = vpop.f32.mrb[1].mxu0  ;;  %v1131_v39 = vmul.f32 -1.442695, %v532_v37  ;;  %v534_v40 = vpop.f32.mrb[1].mxu1 }
 0x130   :  { %v1130_v0 = vmul.f32 -1.442695, %v491_v38  ;;  %v493_v41 = vpop.f32.mrb[2].mxu0  ;;  %v1132_v42 = vmul.f32 -1.442695, %v534_v40  ;;  %v536_v44 = vpop.f32.mrb[2].mxu1 }
 0x131   :  { %1257 = vpow2.f32 %v1129_v36  ;;  %v1133_v43 = vmul.f32 -1.442695, %v493_v41  ;;  %v495_v45 = vpop.f32.mrb[3].mxu0  ;;  %v1135_v46 = vmul.f32 -1.442695, %v536_v44  ;;  %v538_v47 = vpop.f32.mrb[3].mxu1 }
 0x132   :  { %1259 = vpow2.f32 %v1131_v39  ;;  %v1134_v48 = vmul.f32 -1.442695, %v495_v45  ;;  %v1136_v49 = vmul.f32 -1.442695, %v538_v47 }
 0x133   :  { %1261 = vpow2.f32 %v1130_v0 }
 0x134   :  { %1263 = vpow2.f32 %v1132_v42 }
 0x135   :  { %1265 = vpow2.f32 %v1133_v43 }
 0x136   :  { %1267 = vpow2.f32 %v1135_v46 }
 0x137   :  { %1269 = vpow2.f32 %v1134_v48 }
 0x138   :  { %1271 = vpow2.f32 %v1136_v49 }
 0x13b   :  { %v1258_v50 = vpop.eup %1257 }
 0x13c   :  { %v1260_v51 = vpop.eup %1259  ;;  %v651_v52 = vadd.f32 1.0, %v1258_v50 }
 0x13d   :  { %v1262_v53 = vpop.eup %1261  ;;  %v653_v54 = vadd.f32 1.0, %v1260_v51 }
 0x13e   :  { %v1264_v55 = vpop.eup %1263  ;;  %1273 = vrcp.f32 %v651_v52  ;;  %v652_v56 = vadd.f32 1.0, %v1262_v53 }
 0x13f   :  { %v1266_v57 = vpop.eup %1265  ;;  %1275 = vrcp.f32 %v653_v54  ;;  %v654_v58 = vadd.f32 1.0, %v1264_v55 }
 0x140   :  { %v1268_v59 = vpop.eup %1267  ;;  %1277 = vrcp.f32 %v652_v56  ;;  %v655_v60 = vadd.f32 1.0, %v1266_v57 }
 0x141   :  { %v1270_v61 = vpop.eup %1269  ;;  %1279 = vrcp.f32 %v654_v58  ;;  %v657_v62 = vadd.f32 1.0, %v1268_v59 }
 0x142   :  { %v1272_v63 = vpop.eup %1271  ;;  %1281 = vrcp.f32 %v655_v60  ;;  %v656_v1 = vadd.f32 1.0, %v1270_v61 }
 0x143   :  { %1283 = vrcp.f32 %v657_v62  ;;  %v658_v2 = vadd.f32 1.0, %v1272_v63 }
 0x144   :  { %1285 = vrcp.f32 %v656_v1 }
 0x145   :  { %1287 = vrcp.f32 %v658_v2 }
 0x148   :  { %v1274_v3 = vpop.eup %1273 }
 0x149   :  { %v1276_v4 = vpop.eup %1275  ;;  %v675_v10 = vmul.f32 %v1274_v3, %v489_v35 }
 0x14a   :  { %v1278_v5 = vpop.eup %1277  ;;  %v677_v12 = vmul.f32 %v1276_v4, %v532_v37 }
 0x14b   :  { %v1280_v6 = vpop.eup %1279  ;;  %v676_v13 = vmul.f32 %v1278_v5, %v491_v38 }
 0x14c   :  { %v1282_v7 = vpop.eup %1281  ;;  %v678_v15 = vmul.f32 %v1280_v6, %v534_v40 }
 0x14d   :  { %v1284_v9 = vpop.eup %1283  ;;  %v679_v16 = vmul.f32 %v1282_v7, %v493_v41 }
 0x14e   :  { %v1286_v11 = vpop.eup %1285  ;;  %v575_v14 = vpop.f32.mrb[4].mxu0  ;;  %v681_v20 = vmul.f32 %v1284_v9, %v536_v44 }
 0x14f   :  { %v1288_v8 = vpop.eup %1287  ;;  %v683_v17 = vmul.f32 %v675_v10, %v575_v14  ;;  %v618_v18 = vpop.f32.mrb[4].mxu1  ;;  %v680_v21 = vmul.f32 %v1286_v11, %v495_v45 }
 0x150   :  { %v577_v19 = vpop.f32.mrb[5].mxu0  ;;  %v685_v22 = vmul.f32 %v677_v12, %v618_v18  ;;  %v620_v24 = vpop.f32.mrb[5].mxu1  ;;  %v682_v26 = vmul.f32 %v1288_v8, %v538_v47 }
 0x151   :  { %v684_v23 = vmul.f32 %v676_v13, %v577_v19  ;;  %v579_v25 = vpop.f32.mrb[6].mxu0  ;;  %v686_v27 = vmul.f32 %v678_v15, %v620_v24  ;;  %v622_v29 = vpop.f32.mrb[6].mxu1 }
 0x152   :  { %v687_v28 = vmul.f32 %v679_v16, %v579_v25  ;;  %v581_v30 = vpop.f32.mrb[7].mxu0  ;;  %v689_v31 = vmul.f32 %v681_v20, %v622_v29  ;;  %v624_v33 = vpop.f32.mrb[7].mxu1 }
 0x153   :  { %v688_v32 = vmul.f32 %v680_v21, %v581_v30  ;;  %v690_v35 = vmul.f32 %v682_v26, %v624_v33 }
 0x154   :  { %v693_v34 = vpack.c.bf16 %v687_v28, %v683_v17  ;;  %v695_v36 = vpack.c.bf16 %v689_v31, %v685_v22 }
 0x155   :  { %v694_v37 = vpack.c.bf16 %v688_v32, %v684_v23  ;;  %v696_v38 = vpack.c.bf16 %v690_v35, %v686_v27 }
 0x157   :  { %985 = vmatprep.mubr.bf16.mxu0 %v694_v37  ;;  %1026 = vmatprep.mubr.bf16.mxu1 %v696_v38 }
 0x158   :  { %986 = vmatmul.mubr.bf16.vlgmr.msra.gmra.mrb[8].mxu0 %v693_v34  ;;  %1027 = vmatmul.mubr.bf16.vlgmr.msra.gmra.mrb[8].mxu1 %v695_v36 }
 0x22b   :  { %v1185_v39 = vpop.f32.mrb[8].mxu0  ;;  %v1207_v0 = vpop.f32.mrb[8].mxu1 }
 0x22c   :  { %v1186_v40 = vpop.f32.mrb[9].mxu0  ;;  %v1208_v42 = vpop.f32.mrb[9].mxu1 }
 0x22d   :  { %v1187_v41 = vadd.f32 %v1186_v40, %v1185_v39  ;;  %v1188_v43 = vpop.f32.mrb[10].mxu0  ;;  %v1209_v44 = vadd.f32 %v1208_v42, %v1207_v0  ;;  %v1210_v45 = vpop.f32.mrb[10].mxu1 }
 0x22e   :  { %v1189_v46 = vpop.f32.mrb[11].mxu0  ;;  %v1211_v48 = vpop.f32.mrb[11].mxu1 }
 0x22f   :  { %v1190_v47 = vadd.f32 %v1189_v46, %v1188_v43  ;;  %v1029_v49 = vadd.f32 %v1209_v44, %v1187_v41  ;;  %v1212_v50 = vadd.f32 %v1211_v48, %v1210_v45 }
 0x231   :  { %1044 = vst [vmem:[#allocation9] sm:$0xff] %v1029_v49  ;;  %v1032_v51 = vadd.f32 %v1212_v50, %v1190_v47 }
 0x233   :  { %1045 = vst [vmem:[#allocation9 + $0x8] sm:$0xff] %v1032_v51 }
 0x234   :  { %1366 = shalt.err (!%p1363_p0)
}
 0x235   :  { %s1367_s27 = scalar_lea.hbm %s1475_s3, 256 }
 0x236   :  { %p1368_p1 = scmp.ne.s32.totalorder %s1475_s3, %s1367_s27  ;;  %p1371_p2 = scmp.lt.u32.totalorder %s1367_s27, %s1475_s3 }
 0x238   :  { %p1373_p3 = pnand %p1371_p2, %p1368_p1 }
 0x23a   :  { %1376 = shalt.err (!%p1373_p3)
}
 0x23b   :  { %s1392_s5 = smov 128   ;;  %s1393_s6 = smov 8  }
 0x23c   :  { %1057 = dma.vmem_to_hbm [thread:$0]  %s1052_s23, 256, %s1475_s3, [#allocation5], %s1392_s5, %s1392_s5, %s1393_s6  }
 0x23d   :  { %1381 = dma.done.wait [#allocation5], 256  }
 0x23e   :  { %1382 = vsyncadd [#allocation5], 4294967040 }
 0x23f   :  { %1061 = vsyncpa [#allocation4], 1 }
 0x240   :  { %1062 = vsyncpa [#allocation7], 1 }
 0x241   :  { %1063 = vsyncpa [#allocation5], 1 }

</bundles_post_ra>
